<compile_context>
chip_gen: v6e
topology: v6e:2x2x1
jax: 0.10.0
libtpu: 0.0.40
codegen_flags: <defaults>
</compile_context>

<pallas_src>
import jax
import jax.numpy as jnp
from jax.experimental import pallas as pl
from jax.experimental.pallas import tpu as pltpu

LANE = 128          # vreg lane width
BF16_SUBLANE = 16   # bf16 sublane packing depth


def _round_up(x, m):
    return (x + m - 1) // m * m


# --------------------- one-time parameter packing -------------------------- #
def pack_params(params, state_dim, goal_dim):
    """Pad + cast the MLP parameters ONCE into a bf16 weight slab and an f32
    bias slab (done at policy construction time, not per forward call)."""
    w1, b1, w2, b2, w3, b3 = params
    din, h1 = w1.shape
    assert din == state_dim + goal_dim
    h2 = w2.shape[1]
    a = w3.shape[1]

    ds_p = _round_up(state_dim, LANE)
    dg_p = _round_up(goal_dim, LANE)
    din_p = ds_p + dg_p                     # fused first-layer K (256 here)
    h1_p = _round_up(h1, LANE)
    h2_p = _round_up(h2, LANE)
    a_p = _round_up(a, LANE)
    wcols = max(h1_p, h2_p, a_p)
    cdt = jnp.bfloat16

    # Weight slab layout (rows):
    #   [0      : ds_p )  W1 state rows (zero-padded)
    #   [ds_p   : din_p)  W1 goal  rows (zero-padded)
    #   [din_p  : +h1_p)  W2
    #   [+h1_p  : +h2_p)  W3
    wslab = jnp.zeros((din_p + h1_p + h2_p, wcols), cdt)
    wslab = wslab.at[0:state_dim, 0:h1].set(w1[:state_dim].astype(cdt))
    wslab = wslab.at[ds_p:ds_p + goal_dim, 0:h1].set(w1[state_dim:].astype(cdt))
    wslab = wslab.at[din_p:din_p + h1, 0:h2].set(w2.astype(cdt))
    wslab = wslab.at[din_p + h1_p:din_p + h1_p + h2, 0:a].set(w3.astype(cdt))

    # Bias slab: rows 0 / 8 / 16 (sublane-aligned) hold b1 / b2 / b3 in f32.
    bslab = jnp.zeros((24, wcols), jnp.float32)
    bslab = bslab.at[0, 0:h1].set(b1.reshape(-1).astype(jnp.float32))
    bslab = bslab.at[8, 0:h2].set(b2.reshape(-1).astype(jnp.float32))
    bslab = bslab.at[16, 0:a].set(b3.reshape(-1).astype(jnp.float32))

    dims = dict(ds=state_dim, dg=goal_dim, ds_p=ds_p, dg_p=dg_p, din_p=din_p,
                h1=h1, h1_p=h1_p, h2=h2, h2_p=h2_p, a=a, a_p=a_p, wcols=wcols)
    return jax.device_put(wslab), jax.device_put(bslab), dims


# ----------------------------- Pallas kernel ------------------------------- #
def _make_kernel(dims):
    ds, dg = dims["ds"], dims["dg"]
    ds_p, din_p = dims["ds_p"], dims["din_p"]
    h1_p, h2_p, a_p = dims["h1_p"], dims["h2_p"], dims["a_p"]

    def kernel(s_ref, g_ref, w_ref, b_ref, o_ref, x_scr):
        """Linear -> ReLU -> Linear -> ReLU -> Linear.
        bf16 MXU operands, f32 accumulation / bias / ReLU."""
        cdt = x_scr.dtype

        # Build the concatenated, lane-padded input tile in VMEM.
        # Zero every step: padding lanes must be deterministic zeros and the
        # scratch is per-core under megacore sharding (cheap VPU work).
        x_scr[...] = jnp.zeros_like(x_scr)
        x_scr[:, 0:ds] = s_ref[...].astype(cdt)            # state at lane 0
        x_scr[:, ds_p:ds_p + dg] = g_ref[...].astype(cdt)  # goal at 128-aligned lane

        # Static, tile-aligned views into the packed weight / bias slabs.
        w1 = w_ref[0:din_p, 0:h1_p]
        w2 = w_ref[din_p:din_p + h1_p, 0:h2_p]
        w3 = w_ref[din_p + h1_p:din_p + h1_p + h2_p, 0:a_p]
        b1 = b_ref[0:1, 0:h1_p]
        b2 = b_ref[8:9, 0:h2_p]
        b3 = b_ref[16:17, 0:a_p]

        h1 = jnp.dot(x_scr[...], w1, preferred_element_type=jnp.float32) + b1
        h1 = jnp.maximum(h1, 0.0).astype(cdt)
        h2 = jnp.dot(h1, w2, preferred_element_type=jnp.float32) + b2
        h2 = jnp.maximum(h2, 0.0).astype(cdt)
        logits = jnp.dot(h2, w3, preferred_element_type=jnp.float32) + b3
        o_ref[...] = logits.astype(o_ref.dtype)

    return kernel


# ------------------------------ JAX wrapper --------------------------------- #
def make_policy_forward(params, state_dim, goal_dim):
    """Returns a jitted forward(obs, goal) -> logits of shape (B, A)."""
    wslab, bslab, dims = pack_params(params, state_dim, goal_dim)
    kernel = _make_kernel(dims)
    ds, dg = dims["ds"], dims["dg"]
    din_p, a, a_p = dims["din_p"], dims["a"], dims["a_p"]
    h1, h2 = dims["h1"], dims["h2"]

    @jax.jit
    def forward(obs, goal):
        b = obs.shape[0]
        state = obs.reshape(b, -1).astype(jnp.float32)      # Flatten()
        goal_f = goal.reshape(b, -1).astype(jnp.float32)    # Flatten()
        assert state.shape[1] == ds and goal_f.shape[1] == dg

        # Batch tile: multiple of 16 (bf16 sublane packing), up to 1024 rows,
        # and >=2 grid steps for non-trivial batches (v7x megacore).
        b16 = _round_up(b, BF16_SUBLANE)
        tb = min(1024, b16)
        if b16 > 64:
            tb = min(tb, _round_up((b16 + 1) // 2, BF16_SUBLANE))
        b_p = _round_up(b16, tb)
        if b_p != b:
            state = jnp.pad(state, ((0, b_p - b), (0, 0)))
            goal_f = jnp.pad(goal_f, ((0, b_p - b), (0, 0)))
        grid = (b_p // tb,)

        def row_block(shape):                                # tiled over batch
            return pl.BlockSpec(shape, lambda i: (i, 0))

        def resident(arr):                                   # grid-invariant
            # TODO(synk): pipeline_mode=pl.Buffered(1) would drop the dead
            # second buffer if the MLP widths are ever scaled up (v7x 64 MiB VMEM).
            return pl.BlockSpec(arr.shape, lambda i: (0, 0))

        # True (unpadded) flops; bytes = what actually crosses HBM.
        flops = 2 * b * ((ds + dg) * h1 + h1 * h2 + h2 * a)
        bytes_accessed = (4 * b_p * (ds + dg)                # activations in (f32)
                          + 2 * wslab.size + 4 * bslab.size  # params, fetched once
                          + 2 * b_p * a_p)                   # logits out (bf16)

        out = pl.pallas_call(
            kernel,
            out_shape=jax.ShapeDtypeStruct((b_p, a_p), jnp.bfloat16),
            grid=grid,
            in_specs=[
                row_block((tb, ds)),        # state tile, natural width
                row_block((tb, dg)),        # goal tile, natural width
                resident(wslab),            # packed bf16 weight slab
                resident(bslab),            # packed f32 bias slab
            ],
            out_specs=row_block((tb, a_p)),
            scratch_shapes=[pltpu.VMEM((tb, din_p), jnp.bfloat16)],
            compiler_params=pltpu.CompilerParams(
                dimension_semantics=("parallel",)),
            cost_estimate=pl.CostEstimate(
                flops=flops, transcendentals=0, bytes_accessed=bytes_accessed),
        )(state, goal_f, wslab, bslab)

        return out[:b, :a].astype(jnp.float32)

    return forward


# --------------------------- parameter creation ----------------------------- #
def init_params(key, dim_in, layers, dim_out):
    """Deterministic init mimicking torch.nn.Linear (U[-1/sqrt(fan_in), +])."""
    dims = [dim_in] + list(layers) + [dim_out]
    params = []
    for i in range(len(dims) - 1):
        fan_in, fan_out = dims[i], dims[i + 1]
        key, kw, kb = jax.random.split(key, 3)
        bound = 1.0 / jnp.sqrt(fan_in)
        w = jax.random.uniform(kw, (fan_in, fan_out), jnp.float32, -bound, bound)
        bias = jax.random.uniform(kb, (1, fan_out), jnp.float32, -bound, bound)
        params += [w, bias]
    return tuple(params)


# --------------------------- pure-JAX references ----------------------------- #
def reference_forward_f32(obs, goal, params):
    """Torch-faithful full-f32 reference."""
    b = obs.shape[0]
    x = jnp.concatenate(
        [obs.reshape(b, -1), goal.reshape(b, -1)], axis=1).astype(jnp.float32)
    w1, b1, w2, b2, w3, b3 = params
    h1 = jnp.maximum(x @ w1 + b1, 0.0)
    h2 = jnp.maximum(h1 @ w2 + b2, 0.0)
    return h2 @ w3 + b3


def reference_forward_bf16(obs, goal, params):
    """Mirrors the kernel's bf16-operand / f32-accumulate / bf16-store path."""
    b = obs.shape[0]
    x = jnp.concatenate(
        [obs.reshape(b, -1), goal.reshape(b, -1)], axis=1).astype(jnp.bfloat16)
    w1, b1, w2, b2, w3, b3 = params
    h1 = jnp.dot(x, w1.astype(jnp.bfloat16),
                 preferred_element_type=jnp.float32) + b1
    h1 = jnp.maximum(h1, 0.0).astype(jnp.bfloat16)
    h2 = jnp.dot(h1, w2.astype(jnp.bfloat16),
                 preferred_element_type=jnp.float32) + b2
    h2 = jnp.maximum(h2, 0.0).astype(jnp.bfloat16)
    out = jnp.dot(h2, w3.astype(jnp.bfloat16),
                  preferred_element_type=jnp.float32) + b3
    return out.astype(jnp.bfloat16).astype(jnp.float32)


if __name__ == "__main__":
    # Small, self-consistent shapes:
    #   obs, goal: (B, 4, 4) -> flattened 16 each -> dim_in = 32
    #   hidden layers [32, 32], action_space.n = 6
    B, HW = 8, 4
    HIDDEN = [32, 32]
    N_ACTIONS = 6

    key = jax.random.PRNGKey(0)
    k_obs, k_goal, k_params = jax.random.split(key, 3)

    obs = jax.random.normal(k_obs, (B, HW, HW), jnp.float32)
    goal = jax.random.normal(k_goal, (B, HW, HW), jnp.float32)
    params = init_params(k_params, dim_in=2 * HW * HW, layers=HIDDEN,
                         dim_out=N_ACTIONS)

    policy_forward = make_policy_forward(params, state_dim=HW * HW, goal_dim=HW * HW)

    logits = policy_forward(obs, goal)
    jax.block_until_ready(logits)
    assert logits.shape == (B, N_ACTIONS)

    # Tight check vs a reference using the same bf16-operand quantization.
    ref_bf16 = reference_forward_bf16(obs, goal, params)
    assert jnp.allclose(logits, ref_bf16, atol=2e-2, rtol=2e-2), \
        "mismatch vs bf16-mirrored reference"

    # Loose check vs the torch-faithful full-f32 reference (bf16 rounding only).
    ref_f32 = reference_forward_f32(obs, goal, params)
    assert jnp.allclose(logits, ref_f32, atol=6e-2, rtol=6e-2), \
        "mismatch vs f32 reference"

    print("KERNEL_OK")
</pallas_src>

<mosaic_0001>
module attributes {stable_mosaic.version = 11 : i64} {
  func.func @kernel(%arg0: i32, %arg1: memref<16x16xf32, #tpu.memory_space<vmem>>, %arg2: memref<16x16xf32, #tpu.memory_space<vmem>>, %arg3: memref<512x128xbf16, #tpu.memory_space<vmem>>, %arg4: memref<24x128xf32, #tpu.memory_space<vmem>>, %arg5: memref<16x128xbf16, #tpu.memory_space<vmem>>, %arg6: memref<16x256xbf16, #tpu.memory_space<vmem>>) attributes {dimension_semantics = [#tpu.dimension_semantics<parallel>], iteration_bounds = array<i64: 1>, scalar_prefetch = 0 : i64, scratch_operands = 1 : i64, tpu.core_type = #tpu.core_type<tc>, window_params = [{transform_indices = @transform_0, window_bounds = array<i64: 16, 16>}, {transform_indices = @transform_1, window_bounds = array<i64: 16, 16>}, {pipeline_mode = #tpu.pipeline_mode<synchronous>, transform_indices = @transform_2, window_bounds = array<i64: 512, 128>}, {pipeline_mode = #tpu.pipeline_mode<synchronous>, transform_indices = @transform_3, window_bounds = array<i64: 24, 128>}, {transform_indices = @transform_4, window_bounds = array<i64: 16, 128>}]} {
    %cst = arith.constant 0.000000e+00 : bf16
    %0 = vector.broadcast %cst : bf16 to vector<16x256xbf16>
    %c0 = arith.constant 0 : index
    %c0_0 = arith.constant 0 : index
    %1 = vector.load %arg6[%c0, %c0_0] : memref<16x256xbf16, #tpu.memory_space<vmem>>, vector<16x256xbf16>
    tpu.vector_store %arg6[%c0, %c0_0], %0 {strides = array<i32>} : memref<16x256xbf16, #tpu.memory_space<vmem>>, vector<16x256xbf16>,
    %c0_1 = arith.constant 0 : index
    %c0_2 = arith.constant 0 : index
    %2 = vector.load %arg1[%c0_1, %c0_2] : memref<16x16xf32, #tpu.memory_space<vmem>>, vector<16x16xf32>
    %3 = arith.truncf %2 : vector<16x16xf32> to vector<16x16xbf16>
    %c0_3 = arith.constant 0 : index
    %c0_4 = arith.constant 0 : index
    %4 = vector.load %arg6[%c0_3, %c0_4] : memref<16x256xbf16, #tpu.memory_space<vmem>>, vector<16x16xbf16>
    tpu.vector_store %arg6[%c0_3, %c0_4], %3 {strides = array<i32>} : memref<16x256xbf16, #tpu.memory_space<vmem>>, vector<16x16xbf16>,
    %c0_5 = arith.constant 0 : index
    %c0_6 = arith.constant 0 : index
    %5 = vector.load %arg2[%c0_5, %c0_6] : memref<16x16xf32, #tpu.memory_space<vmem>>, vector<16x16xf32>
    %6 = arith.truncf %5 : vector<16x16xf32> to vector<16x16xbf16>
    %c0_7 = arith.constant 0 : index
    %c128 = arith.constant 128 : index
    %7 = vector.load %arg6[%c0_7, %c128] : memref<16x256xbf16, #tpu.memory_space<vmem>>, vector<16x16xbf16>
    tpu.vector_store %arg6[%c0_7, %c128], %6 {strides = array<i32>} : memref<16x256xbf16, #tpu.memory_space<vmem>>, vector<16x16xbf16>,
    %c0_8 = arith.constant 0 : index
    %c0_9 = arith.constant 0 : index
    %8 = vector.load %arg3[%c0_8, %c0_9] : memref<512x128xbf16, #tpu.memory_space<vmem>>, vector<256x128xbf16>
    %c256 = arith.constant 256 : index
    %c0_10 = arith.constant 0 : index
    %9 = vector.load %arg3[%c256, %c0_10] : memref<512x128xbf16, #tpu.memory_space<vmem>>, vector<128x128xbf16>
    %c384 = arith.constant 384 : index
    %c0_11 = arith.constant 0 : index
    %10 = vector.load %arg3[%c384, %c0_11] : memref<512x128xbf16, #tpu.memory_space<vmem>>, vector<128x128xbf16>
    %c0_12 = arith.constant 0 : index
    %c0_13 = arith.constant 0 : index
    %11 = vector.load %arg4[%c0_12, %c0_13] : memref<24x128xf32, #tpu.memory_space<vmem>>, vector<1x128xf32>
    %c8 = arith.constant 8 : index
    %c0_14 = arith.constant 0 : index
    %12 = vector.load %arg4[%c8, %c0_14] : memref<24x128xf32, #tpu.memory_space<vmem>>, vector<1x128xf32>
    %c16 = arith.constant 16 : index
    %c0_15 = arith.constant 0 : index
    %13 = vector.load %arg4[%c16, %c0_15] : memref<24x128xf32, #tpu.memory_space<vmem>>, vector<1x128xf32>
    %c0_16 = arith.constant 0 : index
    %c0_17 = arith.constant 0 : index
    %14 = vector.load %arg6[%c0_16, %c0_17] : memref<16x256xbf16, #tpu.memory_space<vmem>>, vector<16x256xbf16>
    %cst_18 = arith.constant dense<0.000000e+00> : vector<16x128xf32>
    %15 = tpu.matmul %14, %8, %cst_18 {dimension_numbers = #tpu.dot_dimension_numbers<[1], [0], [0], [1], [0, 0, 1, 1], [], []>} : vector<16x256xbf16>, vector<256x128xbf16>, vector<16x128xf32> -> vector<16x128xf32>
    %16 = vector.broadcast %11 : vector<1x128xf32> to vector<16x128xf32>
    %17 = arith.addf %15, %16 : vector<16x128xf32>
    %cst_19 = arith.constant 0.000000e+00 : f32
    %18 = vector.broadcast %cst_19 : f32 to vector<16x128xf32>
    %19 = arith.maximumf %17, %18 : vector<16x128xf32>
    %20 = arith.truncf %19 : vector<16x128xf32> to vector<16x128xbf16>
    %cst_20 = arith.constant dense<0.000000e+00> : vector<16x128xf32>
    %21 = tpu.matmul %20, %9, %cst_20 {dimension_numbers = #tpu.dot_dimension_numbers<[1], [0], [0], [1], [0, 0, 1, 1], [], []>} : vector<16x128xbf16>, vector<128x128xbf16>, vector<16x128xf32> -> vector<16x128xf32>
    %22 = vector.broadcast %12 : vector<1x128xf32> to vector<16x128xf32>
    %23 = arith.addf %21, %22 : vector<16x128xf32>
    %cst_21 = arith.constant 0.000000e+00 : f32
    %24 = vector.broadcast %cst_21 : f32 to vector<16x128xf32>
    %25 = arith.maximumf %23, %24 : vector<16x128xf32>
    %26 = arith.truncf %25 : vector<16x128xf32> to vector<16x128xbf16>
    %cst_22 = arith.constant dense<0.000000e+00> : vector<16x128xf32>
    %27 = tpu.matmul %26, %10, %cst_22 {dimension_numbers = #tpu.dot_dimension_numbers<[1], [0], [0], [1], [0, 0, 1, 1], [], []>} : vector<16x128xbf16>, vector<128x128xbf16>, vector<16x128xf32> -> vector<16x128xf32>
    %28 = vector.broadcast %13 : vector<1x128xf32> to vector<16x128xf32>
    %29 = arith.addf %27, %28 : vector<16x128xf32>
    %30 = arith.truncf %29 : vector<16x128xf32> to vector<16x128xbf16>
    %c0_23 = arith.constant 0 : index
    %c0_24 = arith.constant 0 : index
    %31 = vector.load %arg5[%c0_23, %c0_24] : memref<16x128xbf16, #tpu.memory_space<vmem>>, vector<16x128xbf16>
    tpu.vector_store %arg5[%c0_23, %c0_24], %30 {strides = array<i32>} : memref<16x128xbf16, #tpu.memory_space<vmem>>, vector<16x128xbf16>,
    return
  }
  func.func @transform_0(%arg0: i32) -> (i32, i32) {
    %c0_i32 = arith.constant 0 : i32
    %c0_i32_0 = arith.constant 0 : i32
    return %arg0, %c0_i32 : i32, i32
  }
  func.func @transform_1(%arg0: i32) -> (i32, i32) {
    %c0_i32 = arith.constant 0 : i32
    %c0_i32_0 = arith.constant 0 : i32
    return %arg0, %c0_i32 : i32, i32
  }
  func.func @transform_2(%arg0: i32) -> (i32, i32) {
    %c0_i32 = arith.constant 0 : i32
    %c0_i32_0 = arith.constant 0 : i32
    %c0_i32_1 = arith.constant 0 : i32
    return %c0_i32, %c0_i32_0 : i32, i32
  }
  func.func @transform_3(%arg0: i32) -> (i32, i32) {
    %c0_i32 = arith.constant 0 : i32
    %c0_i32_0 = arith.constant 0 : i32
    %c0_i32_1 = arith.constant 0 : i32
    return %c0_i32, %c0_i32_0 : i32, i32
  }
  func.func @transform_4(%arg0: i32) -> (i32, i32) {
    %c0_i32 = arith.constant 0 : i32
    %c0_i32_0 = arith.constant 0 : i32
    return %arg0, %c0_i32 : i32, i32
  }
}

</mosaic_0001>

<bundles_post_ra>
// kernel: forward.1
= control target key start
LH: loop header
LB: loop body
LE: loop exit
PB: predicated region body
PF: predicated region fallthrough
CT: control target
= control target key end

     0   :  { %9 = vsyncpa [#allocation4], 0  ;;  %s683_s15 = smov [#allocation3]   ;;  %s759_s0 = inlined_call_operand.vmem [shape: f32[16,16], index: 0, kind: input, shape index: {}]   ;;  %s760_s1 = inlined_call_operand.vmem [shape: f32[16,16], index: 1, kind: input, shape index: {}]   ;;  %s761_s2 = inlined_call_operand.hbm [shape: bf16[512,128], index: 2, kind: input, shape index: {}]   ;;  %s762_s3 = inlined_call_operand.vmem [shape: f32[24,128], index: 3, kind: input, shape index: {}]   ;;  %s763_s4 = inlined_call_operand.vmem [shape: bf16[16,128], index: 4, kind: output, shape index: {}]  }
   0x1   :  { %s19_s16 = sshll.u32 %s683_s15, 4  ;;  %s20_s16 = int_to_ptr.vmem [resolvable:$true] %s19_s16 }
   0x2   :  { %s669_s17 = scalar_lea.vmem %s20_s16, 4096  ;;  %p674_p1 = scmp.lt.s32.totalorder %s20_s16, %s20_s16 }
   0x3   :  { %p670_p0 = scmp.ne.s32.totalorder %s20_s16, %s669_s17  ;;  %p675_p2 = scmp.lt.s32.totalorder %s669_s17, %s669_s17 }
   0x5   :  { %p676_p3 = por %p675_p2, %p674_p1 }
   0x7   :  { %p677_p4 = pnand %p676_p3, %p670_p0 }
   0x9   :  { %680 = shalt.err (!%p677_p4)
}
   0xa   :  { %s684_s18 = smov 64   ;;  %s685_s19 = smov 4  }
   0xb   :  { %25 = dma.hbm_to_vmem [thread:$0]  %s761_s2, 4096, %s20_s16, [#allocation4], %s684_s18, %s684_s18, %s685_s19  }
   0xc   :  { %681 = dma.done.wait [#allocation4], 4096  }
   0xd   :  { %682 = vsyncadd [#allocation4], 4294963200  ;;  %v686_v0 = vmov 0   ;;  %v687_v1 = vmov 0.0   ;;  %v626_v2 = vld [vmem:[#allocation3 + $0x78] sm:$0xff]   ;;  %v628_v4 = vld [vmem:[#allocation3 + $0x70] sm:$0xff]  }
   0xe   :  { %32 = vst [vmem:[#allocation2] sm:$0xff] %v686_v0  ;;  %33 = vst [vmem:[#allocation2 + $0x8] sm:$0xff] %v686_v0  ;;  %580 = vmatprep.subr.bf16.mxu1 %v687_v1  ;;  %v627_v3 = vld [vmem:[#allocation3 + $0x38] sm:$0xff]   ;;  %540 = vmatprep.subr.bf16.mxu0 %v626_v2  ;;  %v629_v5 = vld [vmem:[#allocation3 + $0x30] sm:$0xff]   ;;  %vm44_vm0 = vcmask 125952   ;;  %vm688_vm1 = vmmov 0  }
   0xf   :  { %541 = vmatpush3.bf16.msra.mxu0 %v627_v3  ;;  %v630_v6 = vld [vmem:[#allocation3 + $0x68] sm:$0xff]   ;;  %v632_v8 = vld [vmem:[#allocation3 + $0x60] sm:$0xff]   ;;  %v634_v10 = vld [vmem:[#allocation3 + $0x58] sm:$0xff]   ;;  %596 = vmatprep.mubr.msk.bf16.mxu1 %vm688_vm1, %v687_v1 }
  0x10   :  { %542 = vmatprep.subr.bf16.mxu0 %v628_v4  ;;  %v631_v7 = vld [vmem:[#allocation3 + $0x28] sm:$0xff]   ;;  %v633_v9 = vld [vmem:[#allocation3 + $0x20] sm:$0xff]   ;;  %v635_v11 = vld [vmem:[#allocation3 + $0x18] sm:$0xff]  }
  0x11   :  { %v636_v12 = vld [vmem:[#allocation3 + $0x50] sm:$0xff]   ;;  %v35_v14 = vld [vmem:[%s759_s0 + $0x8] sm:$0xff]  ;;  %v638_v23 = vld [vmem:[#allocation3 + $0x48] sm:$0xff]  }
  0x12   :  { %v34_v13 = vld [vmem:[%s759_s0] sm:$0xff]  ;;  %v530_v18 = vpack.c.bf16 %v35_v14, %v35_v14  ;;  %v48_v19 = vld [vmem:[%s760_s1 + $0x8] sm:$0xff]  ;;  %v639_v25 = vld [vmem:[#allocation3 + $0x8] sm:$0xff]  }
  0x13   :  { %543 = vmatpush3.bf16.msra.mxu0 %v629_v5  ;;  %v47_v15 = vld [vmem:[%s760_s1] sm:$0xff]  ;;  %v529_v17 = vpack.c.bf16 %v34_v13, %v34_v13  ;;  %v532_v21 = vpack.c.bf16 %v48_v19, %v48_v19  ;;  %v645_v22 = vld [vmem:[#allocation3 + $0xb8] sm:$0xff]   ;;  %v640_v26 = vld [vmem:[#allocation3 + $0x40] sm:$0xff]  }
  0x14   :  { %544 = vmatprep.subr.bf16.mxu0 %v630_v6  ;;  %v637_v16 = vld [vmem:[#allocation3 + $0x10] sm:$0xff]   ;;  %v531_v20 = vpack.c.bf16 %v47_v15, %v47_v15  ;;  %46 = vst.msk [vmem:[#allocation2 + $0x8] sm:$0xf] %vm44_vm0, %v530_v18  ;;  %581 = vmatpush3.bf16.msra.mxu1 %v645_v22  ;;  %v647_v27 = vld [vmem:[#allocation3 + $0xa8] sm:$0xff]   ;;  %v641_v28 = vld [vmem:[#allocation3] sm:$0xff]  }
  0x15   :  { %45 = vst.msk [vmem:[#allocation2] sm:$0xf] %vm44_vm0, %v529_v17  ;;  %58 = vst.msk [vmem:[#allocation2 + $0xc] sm:$0xf] %vm44_vm0, %v532_v21  ;;  %v646_v24 = vld [vmem:[#allocation3 + $0xb0] sm:$0xff]   ;;  %582 = vmatprep.subr.bf16.mxu1 %v687_v1  ;;  %v648_v30 = vld [vmem:[#allocation3 + $0xa0] sm:$0xff]  }
  0x16   :  { %57 = vst.msk [vmem:[#allocation2 + $0x4] sm:$0xf] %vm44_vm0, %v531_v20  ;;  %v649_v32 = vld [vmem:[#allocation3 + $0x98] sm:$0xff]   ;;  %v650_v33 = vld [vmem:[#allocation3 + $0x90] sm:$0xff]   ;;  %v651_v34 = vld [vmem:[#allocation3 + $0x88] sm:$0xff]  }
  0x17   :  { %545 = vmatpush3.bf16.msra.mxu0 %v631_v7  ;;  %v652_v35 = vld [vmem:[#allocation3 + $0x80] sm:$0xff]   ;;  %v653_v36 = vld [vmem:[#allocation3 + $0xf8] sm:$0xff]   ;;  %v654_v37 = vld [vmem:[#allocation3 + $0xf0] sm:$0xff]  }
  0x18   :  { %546 = vmatprep.subr.bf16.mxu0 %v632_v8  ;;  %583 = vmatpush3.bf16.msra.mxu1 %v646_v24  ;;  %v655_v38 = vld [vmem:[#allocation3 + $0xe8] sm:$0xff]   ;;  %v656_v39 = vld [vmem:[#allocation3 + $0xe0] sm:$0xff]   ;;  %v657_v40 = vld [vmem:[#allocation3 + $0xd8] sm:$0xff]  }
  0x19   :  { %584 = vmatprep.subr.bf16.mxu1 %v687_v1  ;;  %v490_v44 = vld [vmem:[%s762_s3] ss:$0 sm:$0xff]  ;;  %v659_v54 = vld [vmem:[#allocation3 + $0xc8] sm:$0xff]   ;;  %v660_v55 = vld [vmem:[#allocation3 + $0xc0] sm:$0xff]  }
  0x1a   :  { %v658_v53 = vld [vmem:[#allocation3 + $0xd0] sm:$0xff]   ;;  %v509_v56 = vld [vmem:[%s762_s3 + $0x8] ss:$0 sm:$0xff] }
  0x1b   :  { %547 = vmatpush3.bf16.msra.mxu0 %v633_v9 }
  0x1c   :  { %548 = vmatprep.subr.bf16.mxu0 %v634_v10  ;;  %585 = vmatpush3.bf16.msra.mxu1 %v647_v27  ;;  %v642_v31 = vld [vmem:[#allocation2] ss:$8 sps:$4 sm:$0xff]  }
  0x1d   :  { %v644_v29 = vld [vmem:[#allocation2 + $0x4] ss:$8 sps:$4 sm:$0xff]   ;;  %586 = vmatprep.subr.bf16.mxu1 %v687_v1 }
  0x1e   :  { %270 = vmatprep.mubr.bf16.mxu0 %v644_v29 }
  0x1f   :  { %549 = vmatpush3.bf16.msra.mxu0 %v635_v11 }
  0x20   :  { %550 = vmatprep.subr.bf16.mxu0 %v636_v12  ;;  %587 = vmatpush3.bf16.msra.mxu1 %v648_v30 }
  0x21   :  { %588 = vmatprep.subr.bf16.mxu1 %v687_v1 }
  0x23   :  { %551 = vmatpush3.bf16.msra.mxu0 %v637_v16 }
  0x24   :  { %552 = vmatprep.subr.bf16.mxu0 %v638_v23  ;;  %589 = vmatpush3.bf16.msra.mxu1 %v649_v32 }
  0x25   :  { %590 = vmatprep.subr.bf16.mxu1 %v687_v1 }
  0x27   :  { %553 = vmatpush3.bf16.msra.mxu0 %v639_v25 }
  0x28   :  { %554 = vmatprep.subr.bf16.mxu0 %v640_v26  ;;  %591 = vmatpush3.bf16.msra.mxu1 %v650_v33 }
  0x29   :  { %592 = vmatprep.subr.bf16.mxu1 %v687_v1 }
  0x2b   :  { %555 = vmatpush3.bf16.msra.mxu0 %v641_v28 }
  0x2c   :  { %600 = vmatprep.subr.bf16.mxu0 %v687_v1  ;;  %593 = vmatpush3.bf16.msra.mxu1 %v651_v34 }
  0x2d   :  { %594 = vmatprep.subr.bf16.mxu1 %v687_v1 }
  0x2e   :  { %271 = vmatmul.mubr.bf16.vlgmr.msra.gmra.mxu0 %v642_v31 }
  0x2f   :  { %616 = vmatprep.mubr.msk.bf16.mxu0 %vm688_vm1, %v687_v1  ;;  %601 = vmatpush3.bf16.msra.mxu0 %v653_v36 }
  0x30   :  { %595 = vmatpush3.bf16.msra.mxu1 %v652_v35  ;;  %602 = vmatprep.subr.bf16.mxu0 %v687_v1 }
  0x33   :  { %603 = vmatpush3.bf16.msra.mxu0 %v654_v37 }
  0x34   :  { %604 = vmatprep.subr.bf16.mxu0 %v687_v1 }
  0x37   :  { %605 = vmatpush3.bf16.msra.mxu0 %v655_v38 }
  0x38   :  { %606 = vmatprep.subr.bf16.mxu0 %v687_v1 }
  0x3b   :  { %607 = vmatpush3.bf16.msra.mxu0 %v656_v39 }
  0x3c   :  { %608 = vmatprep.subr.bf16.mxu0 %v687_v1 }
  0x3f   :  { %609 = vmatpush3.bf16.msra.mxu0 %v657_v40 }
  0x40   :  { %610 = vmatprep.subr.bf16.mxu0 %v687_v1 }
  0x43   :  { %611 = vmatpush3.bf16.msra.mxu0 %v658_v53 }
  0x44   :  { %612 = vmatprep.subr.bf16.mxu0 %v687_v1 }
  0x47   :  { %613 = vmatpush3.bf16.msra.mxu0 %v659_v54 }
  0x48   :  { %614 = vmatprep.subr.bf16.mxu0 %v687_v1  ;;  %v518_v1 = vld [vmem:[%s762_s3 + $0x10] ss:$0 sm:$0xff] }
  0x4b   :  { %615 = vmatpush3.bf16.msra.mxu0 %v660_v55 }
  0xee   :  { %v556_v41 = vpop.f32.mrf.mxu0 }
  0xf0   :  { %v557_v42 = vpop.f32.mrf.mxu0 }
  0xf1   :  { %v558_v43 = vadd.f32 %v557_v42, %v556_v41 }
  0xf2   :  { %v559_v45 = vpop.f32.mrf.mxu0 }
  0xf3   :  { %v273_v47 = vadd.f32 %v558_v43, %v490_v44 }
  0xf4   :  { %v560_v46 = vpop.f32.mrf.mxu0 }
  0xf5   :  { %v561_v48 = vadd.f32 %v560_v46, %v559_v45  ;;  %v279_v50 = vmax.f32 %v273_v47, 0.0 }
  0xf7   :  { %v276_v49 = vadd.f32 %v561_v48, %v490_v44 }
  0xf9   :  { %v280_v51 = vmax.f32 %v276_v49, 0.0 }
  0xfb   :  { %v281_v52 = vpack.c.bf16 %v280_v51, %v279_v50 }
  0xfd   :  { %597 = vmatmul.mubr.bf16.vlgmr.msra.gmra.mxu1 %v281_v52 }
 0x1bd   :  { %v368_v57 = vpop.f32.mrf.mxu1 }
 0x1be   :  { %v369_v59 = vadd.f32 %v509_v56, %v368_v57 }
 0x1bf   :  { %v598_v58 = vpop.f32.mrf.mxu1 }
 0x1c0   :  { %v375_v63 = vmax.f32 %v369_v59, 0.0 }
 0x1c1   :  { %v371_v60 = vpop.f32.mrf.mxu1 }
 0x1c2   :  { %v372_v61 = vadd.f32 %v509_v56, %v371_v60 }
 0x1c3   :  { %v599_v62 = vpop.f32.mrf.mxu1 }
 0x1c4   :  { %v376_v0 = vmax.f32 %v372_v61, 0.0 }
 0x1c6   :  { %v377_v2 = vpack.c.bf16 %v376_v0, %v375_v63 }
 0x1c8   :  { %617 = vmatmul.mubr.bf16.vlgmr.msra.gmra.mxu0 %v377_v2 }
 0x288   :  { %v464_v3 = vpop.f32.mrf.mxu0 }
 0x289   :  { %v465_v6 = vadd.f32 %v518_v1, %v464_v3 }
 0x28a   :  { %v618_v4 = vpop.f32.mrf.mxu0 }
 0x28c   :  { %v467_v5 = vpop.f32.mrf.mxu0 }
 0x28d   :  { %v468_v7 = vadd.f32 %v518_v1, %v467_v5 }
 0x28e   :  { %v619_v8 = vpop.f32.mrf.mxu0 }
 0x28f   :  { %v538_v9 = vpack.c.bf16 %v468_v7, %v465_v6 }
 0x291   :  { %539 = vst [vmem:[%s763_s4] sm:$0xff] %v538_v9  }
 0x292   :  { %485 = vsyncpa [#allocation4], 1 }

</bundles_post_ra>
